<compile_context>
chip_gen: v7x
topology: tpu7x:2x2x1
jax: 0.10.0
libtpu: 0.0.40
codegen_flags: <defaults>
</compile_context>

<pallas_src>
import functools
import math

import numpy as np

import jax
import jax.numpy as jnp
from jax.experimental import pallas as pl
from jax.experimental.pallas import tpu as pltpu

_EPS = 1e-5


# ---------------------------------------------------------------------------
# kernels
# ---------------------------------------------------------------------------
def _up2_kernel(x_ref, ay_ref, axt_ref, o_ref):
    # x: (TC, h, w), ay: (2h, h), axt: (w, 2w), o: (TC, 2h, 2w)
    ay = ay_ref[...]
    axt = axt_ref[...]
    for c in range(x_ref.shape[0]):
        t = jnp.dot(ay, x_ref[c], preferred_element_type=jnp.float32)
        o_ref[c] = jnp.dot(t, axt, preferred_element_type=jnp.float32).astype(o_ref.dtype)


def _cat_conv1x1_kernel(a_ref, b_ref, wa_ref, wb_ref, s_ref, t_ref, o_ref):
    # a: (Ca, TP), b: (Cb, TP), wa: (Cout, Ca), wb: (Cout, Cb), s/t: (Cout, 1)
    # conv1x1(cat(a, b)) == Wa @ a + Wb @ b  -> fused BN/bias affine -> ReLU
    acc = jnp.dot(wa_ref[...], a_ref[...], preferred_element_type=jnp.float32)
    acc = acc + jnp.dot(wb_ref[...], b_ref[...], preferred_element_type=jnp.float32)
    y = acc * s_ref[...] + t_ref[...]
    o_ref[...] = jnp.maximum(y, 0.0).astype(o_ref.dtype)


def _conv3x3_kernel(x_ref, w_ref, s_ref, t_ref, o_ref, xp_ref, *, width, pad):
    # x: (Cin, HW) flattened pixels, w: (9, Cout, Cin), s/t: (Cout, 1), o: (Cout, HW)
    # xp scratch: (Cin, HW + 2*pad); zero borders emulate spatial zero padding.
    cin, hw = x_ref.shape
    cout = o_ref.shape[0]
    xp_ref[...] = jnp.zeros_like(xp_ref)
    xp_ref[:, pad:pad + hw] = x_ref[...]

    col = jax.lax.broadcasted_iota(jnp.int32, (1, hw), 1) % width
    not_last = (col != width - 1).astype(jnp.float32)   # dx = +1 invalid at w == W-1
    not_first = (col != 0).astype(jnp.float32)          # dx = -1 invalid at w == 0

    acc = jnp.zeros((cout, hw), jnp.float32)
    tap = 0
    for dy in (-1, 0, 1):
        for dx in (-1, 0, 1):
            k = dy * width + dx
            xs = xp_ref[:, pad + k: pad + k + hw]        # (Cin, HW) shifted view
            contrib = jnp.dot(w_ref[tap], xs, preferred_element_type=jnp.float32)
            if dx == 1:
                contrib = contrib * not_last
            elif dx == -1:
                contrib = contrib * not_first
            acc = acc + contrib
            tap += 1

    y = acc * s_ref[...] + t_ref[...]
    o_ref[...] = jnp.maximum(y, 0.0).astype(o_ref.dtype)


# ---------------------------------------------------------------------------
# wrappers
# ---------------------------------------------------------------------------
def _round_up(a, b):
    return (a + b - 1) // b * b


def _pick_pixel_tile(hw, target=2048):
    # Largest lane-dense tile (multiple of 128) that divides hw, capped at `target`;
    # fall back to the full extent for small / odd spatial sizes.
    if hw <= target or hw % 128 != 0:
        return hw
    t = target - target % 128
    while t >= 128:
        if hw % t == 0:
            return t
        t -= 128
    return hw


def _interp_matrix(n_in):
    # (2*n_in, n_in) matrix implementing F.interpolate(scale_factor=2,
    # mode='bilinear', align_corners=True) along one axis.
    n_out = 2 * n_in
    if n_in == 1:
        src = np.zeros((n_out,), np.float64)
    else:
        src = np.arange(n_out, dtype=np.float64) * (n_in - 1) / (n_out - 1)
    i0 = np.clip(np.floor(src).astype(np.int64), 0, n_in - 1)
    i1 = np.minimum(i0 + 1, n_in - 1)
    f = src - i0
    mat = np.zeros((n_out, n_in), np.float32)
    mat[np.arange(n_out), i0] += (1.0 - f).astype(np.float32)
    mat[np.arange(n_out), i1] += f.astype(np.float32)
    return jnp.asarray(mat)


def upsample2x(x):
    n, c, h, w = x.shape
    ay = _interp_matrix(h)        # (2h, h)
    axt = _interp_matrix(w).T     # (w, 2w)
    tc = 1
    for cand in (16, 8, 4, 2, 1):
        if c % cand == 0:
            tc = cand
            break
    grid = (n, c // tc)
    return pl.pallas_call(
        _up2_kernel,
        out_shape=jax.ShapeDtypeStruct((n, c, 2 * h, 2 * w), x.dtype),
        grid_spec=pltpu.PrefetchScalarGridSpec(
            num_scalar_prefetch=0,
            grid=grid,
            in_specs=[
                pl.BlockSpec((None, tc, h, w), lambda i, j: (i, j, 0, 0)),
                pl.BlockSpec((2 * h, h), lambda i, j: (0, 0)),
                pl.BlockSpec((w, 2 * w), lambda i, j: (0, 0)),
            ],
            out_specs=pl.BlockSpec((None, tc, 2 * h, 2 * w), lambda i, j: (i, j, 0, 0)),
        ),
        compiler_params=pltpu.CompilerParams(
            dimension_semantics=("parallel", "parallel")),
    )(x, ay, axt)


def cat_conv1x1_bn_relu(a, b, wa, wb, s, t):
    n, ca, h, w = a.shape
    cb = b.shape[1]
    cout = wa.shape[0]
    hw = h * w
    tp = _pick_pixel_tile(hw)
    af = a.reshape(n, ca, hw)     # free reshape: NCHW is already channels-major
    bf = b.reshape(n, cb, hw)
    grid = (n, hw // tp)
    of = pl.pallas_call(
        _cat_conv1x1_kernel,
        out_shape=jax.ShapeDtypeStruct((n, cout, hw), jnp.float32),
        grid_spec=pltpu.PrefetchScalarGridSpec(
            num_scalar_prefetch=0,
            grid=grid,
            in_specs=[
                pl.BlockSpec((None, ca, tp), lambda i, j: (i, 0, j)),
                pl.BlockSpec((None, cb, tp), lambda i, j: (i, 0, j)),
                pl.BlockSpec((cout, ca), lambda i, j: (0, 0)),
                pl.BlockSpec((cout, cb), lambda i, j: (0, 0)),
                pl.BlockSpec((cout, 1), lambda i, j: (0, 0)),
                pl.BlockSpec((cout, 1), lambda i, j: (0, 0)),
            ],
            out_specs=pl.BlockSpec((None, cout, tp), lambda i, j: (i, 0, j)),
        ),
        compiler_params=pltpu.CompilerParams(
            dimension_semantics=("parallel", "parallel")),
    )(af, bf, wa, wb, s, t)
    return of.reshape(n, cout, h, w)


def conv3x3_bn_relu(x, w9, s, t):
    n, cin, h, w = x.shape
    cout = w9.shape[1]
    hw = h * w
    pad = _round_up(w + 1, 128)   # aligned zero-pad region on both sides
    xf = x.reshape(n, cin, hw)
    kernel = functools.partial(_conv3x3_kernel, width=w, pad=pad)
    of = pl.pallas_call(
        kernel,
        out_shape=jax.ShapeDtypeStruct((n, cout, hw), jnp.float32),
        grid_spec=pltpu.PrefetchScalarGridSpec(
            num_scalar_prefetch=0,
            grid=(n,),
            in_specs=[
                pl.BlockSpec((None, cin, hw), lambda i: (i, 0, 0)),
                pl.BlockSpec((9, cout, cin), lambda i: (0, 0, 0)),
                pl.BlockSpec((cout, 1), lambda i: (0, 0)),
                pl.BlockSpec((cout, 1), lambda i: (0, 0)),
            ],
            out_specs=pl.BlockSpec((None, cout, hw), lambda i: (i, 0, 0)),
            scratch_shapes=[pltpu.VMEM((cin, hw + 2 * pad), jnp.float32)],
        ),
        compiler_params=pltpu.CompilerParams(dimension_semantics=("parallel",)),
    )(xf, w9, s, t)
    return of.reshape(n, cout, h, w)


def merge_forward(xs, p):
    """Pallas forward of merge(conv1_5=True, inception=False). xs = (x0, x1, x2, x3)."""
    x0, x1, x2, x3 = xs
    # stage 1: up(x3) ++ x2 -> conv1(1x1)+bn1+relu -> conv2(3x3)+bn2+relu
    u = upsample2x(x3)
    y = cat_conv1x1_bn_relu(u, x2, p["w1a"], p["w1b"], p["s1"], p["t1"])
    y = conv3x3_bn_relu(y, p["w2"], p["s2"], p["t2"])
    # stage 2: up(y) ++ x1 -> conv3(1x1)+bn3+relu -> conv4(3x3)+bn4+relu
    u = upsample2x(y)
    y = cat_conv1x1_bn_relu(u, x1, p["w3a"], p["w3b"], p["s3"], p["t3"])
    y = conv3x3_bn_relu(y, p["w4"], p["s4"], p["t4"])
    # stage 3: up(y) ++ x0 -> conv5(1x1)+bn5+relu -> conv6(3x3)+bn6+relu -> conv7(3x3)+bn7+relu
    u = upsample2x(y)
    y = cat_conv1x1_bn_relu(u, x0, p["w5a"], p["w5b"], p["s5"], p["t5"])
    y = conv3x3_bn_relu(y, p["w6"], p["s6"], p["t6"])
    y = conv3x3_bn_relu(y, p["w7"], p["s7"], p["t7"])
    return y


# ---------------------------------------------------------------------------
# parameters (PyTorch-equivalent init) and folding
# ---------------------------------------------------------------------------
_CONV_SHAPES = [
    (128, 1024, 1, 1),  # conv1: cat(up(x3)=512, x2=512)
    (128, 128, 3, 3),   # conv2
    (64, 384, 1, 1),    # conv3: cat(up(y)=128, x1=256)
    (64, 64, 3, 3),     # conv4
    (32, 192, 1, 1),    # conv5: cat(up(y)=64, x0=128)
    (32, 32, 3, 3),     # conv6
    (32, 32, 3, 3),     # conv7
]


def make_params(key):
    """kaiming_normal(mode='fan_out', relu) conv weights, zero conv bias,
    BatchNorm at PyTorch init (gamma=1, beta=0, running_mean=0, running_var=1)."""
    keys = jax.random.split(key, len(_CONV_SHAPES))
    ws, bs, bn = [], [], []
    for k, (cout, cin, kh, kw) in zip(keys, _CONV_SHAPES):
        std = math.sqrt(2.0 / (cout * kh * kw))
        ws.append(jax.random.normal(k, (cout, cin, kh, kw), jnp.float32) * std)
        bs.append(jnp.zeros((cout,), jnp.float32))
        bn.append(dict(gamma=jnp.ones((cout,), jnp.float32),
                       beta=jnp.zeros((cout,), jnp.float32),
                       mean=jnp.zeros((cout,), jnp.float32),
                       var=jnp.ones((cout,), jnp.float32)))
    return ws, bs, bn


def fold_params(raw):
    """Fold conv bias + eval-mode BN into per-channel (scale, bias), split the 1x1
    weights at the concat boundary, and reorder 3x3 weights to (9, Cout, Cin)."""
    ws, bs, bn = raw

    def affine(i):
        s = bn[i]["gamma"] / jnp.sqrt(bn[i]["var"] + _EPS)
        t = bn[i]["beta"] + s * (bs[i] - bn[i]["mean"])
        return s.reshape(-1, 1), t.reshape(-1, 1)

    def split1x1(i, ca):
        w = ws[i][:, :, 0, 0]          # (Cout, Cin)
        return w[:, :ca], w[:, ca:]    # upsampled-branch part, skip part

    def taps(i):
        w = ws[i]                      # (Cout, Cin, 3, 3)
        return jnp.stack([w[:, :, dy, dx] for dy in range(3) for dx in range(3)], axis=0)

    p = {}
    p["w1a"], p["w1b"] = split1x1(0, 512)   # up(x3) has 512 channels
    p["s1"], p["t1"] = affine(0)
    p["w2"] = taps(1)
    p["s2"], p["t2"] = affine(1)
    p["w3a"], p["w3b"] = split1x1(2, 128)   # up(conv2 out) has 128 channels
    p["s3"], p["t3"] = affine(2)
    p["w4"] = taps(3)
    p["s4"], p["t4"] = affine(3)
    p["w5a"], p["w5b"] = split1x1(4, 64)    # up(conv4 out) has 64 channels
    p["s5"], p["t5"] = affine(4)
    p["w6"] = taps(5)
    p["s6"], p["t6"] = affine(5)
    p["w7"] = taps(6)
    p["s7"], p["t7"] = affine(6)
    return p


# ---------------------------------------------------------------------------
# pure-JAX reference (XLA) of the PyTorch forward semantics
# ---------------------------------------------------------------------------
def reference_forward(xs, raw):
    ws, bs, bn = raw
    hi = jax.lax.Precision.HIGHEST

    def conv(x, w, b, pad):
        y = jax.lax.conv_general_dilated(
            x, w, window_strides=(1, 1), padding=[(pad, pad), (pad, pad)],
            dimension_numbers=("NCHW", "OIHW", "NCHW"), precision=hi)
        return y + b.reshape(1, -1, 1, 1)

    def bnrelu(y, i):
        g = bn[i]["gamma"].reshape(1, -1, 1, 1)
        bt = bn[i]["beta"].reshape(1, -1, 1, 1)
        m = bn[i]["mean"].reshape(1, -1, 1, 1)
        v = bn[i]["var"].reshape(1, -1, 1, 1)
        return jnp.maximum((y - m) / jnp.sqrt(v + _EPS) * g + bt, 0.0)

    def up(x):
        _, _, h, w = x.shape
        ay = _interp_matrix(h)
        ax = _interp_matrix(w)
        return jnp.einsum("Hh,nchw,Ww->ncHW", ay, x, ax, precision=hi)

    x0, x1, x2, x3 = xs
    y = up(x3)
    y = jnp.concatenate([y, x2], axis=1)
    y = bnrelu(conv(y, ws[0], bs[0], 0), 0)
    y = bnrelu(conv(y, ws[1], bs[1], 1), 1)
    y = up(y)
    y = jnp.concatenate([y, x1], axis=1)
    y = bnrelu(conv(y, ws[2], bs[2], 0), 2)
    y = bnrelu(conv(y, ws[3], bs[3], 1), 3)
    y = up(y)
    y = jnp.concatenate([y, x0], axis=1)
    y = bnrelu(conv(y, ws[4], bs[4], 0), 4)
    y = bnrelu(conv(y, ws[5], bs[5], 1), 5)
    y = bnrelu(conv(y, ws[6], bs[6], 1), 6)
    return y


if __name__ == "__main__":
    key = jax.random.PRNGKey(0)
    kx, kp = jax.random.split(key)
    k0, k1, k2, k3 = jax.random.split(kx, 4)

    n, h, w = 2, 16, 16
    # FPN inputs at strides 1x, 2x, 4x, 8x with channels (two, thr, four, five)
    x0 = jax.random.normal(k0, (n, 128, h, w), jnp.float32)
    x1 = jax.random.normal(k1, (n, 256, h // 2, w // 2), jnp.float32)
    x2 = jax.random.normal(k2, (n, 512, h // 4, w // 4), jnp.float32)
    x3 = jax.random.normal(k3, (n, 512, h // 8, w // 8), jnp.float32)

    raw = make_params(kp)
    params = fold_params(raw)

    y = merge_forward((x0, x1, x2, x3), params)
    y = jax.block_until_ready(y)

    y_ref = reference_forward((x0, x1, x2, x3), raw)
    assert y.shape == (n, 32, h, w), y.shape
    max_err = float(jnp.max(jnp.abs(y - y_ref)))
    assert jnp.allclose(y, y_ref, atol=2e-3, rtol=2e-3), f"max abs err {max_err}"
    print("KERNEL_OK")
</pallas_src>

<mosaic_0001>
module attributes {stable_mosaic.version = 11 : i64} {
  func.func @_up2_kernel(%arg0: i32, %arg1: i32, %arg2: memref<1x16x2x2xf32, #tpu.memory_space<vmem>>, %arg3: memref<4x2xf32, #tpu.memory_space<vmem>>, %arg4: memref<2x4xf32, #tpu.memory_space<vmem>>, %arg5: memref<1x16x4x4xf32, #tpu.memory_space<vmem>>) attributes {dimension_semantics = [#tpu.dimension_semantics<parallel>, #tpu.dimension_semantics<parallel>], iteration_bounds = array<i64: 2, 32>, scalar_prefetch = 0 : i64, scratch_operands = 0 : i64, tpu.core_type = #tpu.core_type<tc>, window_params = [{transform_indices = @transform_0, window_bounds = array<i64: 1, 16, 2, 2>}, {pipeline_mode = #tpu.pipeline_mode<synchronous>, transform_indices = @transform_1, window_bounds = array<i64: 4, 2>}, {pipeline_mode = #tpu.pipeline_mode<synchronous>, transform_indices = @transform_2, window_bounds = array<i64: 2, 4>}, {transform_indices = @transform_3, window_bounds = array<i64: 1, 16, 4, 4>}]} {
    %c0 = arith.constant 0 : index
    %c0_0 = arith.constant 0 : index
    %0 = vector.load %arg3[%c0, %c0_0] : memref<4x2xf32, #tpu.memory_space<vmem>>, vector<4x2xf32>
    %c0_1 = arith.constant 0 : index
    %c0_2 = arith.constant 0 : index
    %1 = vector.load %arg4[%c0_1, %c0_2] : memref<2x4xf32, #tpu.memory_space<vmem>>, vector<2x4xf32>
    %c0_3 = arith.constant 0 : index
    %c0_4 = arith.constant 0 : index
    %c0_5 = arith.constant 0 : index
    %c0_6 = arith.constant 0 : index
    %2 = vector.load %arg2[%c0_3, %c0_4, %c0_5, %c0_6] : memref<1x16x2x2xf32, #tpu.memory_space<vmem>>, vector<1x1x2x2xf32>
    %3 = vector.shape_cast %2 : vector<1x1x2x2xf32> to vector<2x2xf32>
    %cst = arith.constant dense<0.000000e+00> : vector<4x2xf32>
    %4 = tpu.matmul %0, %3, %cst {dimension_numbers = #tpu.dot_dimension_numbers<[1], [0], [0], [1], [0, 0, 1, 1], [], []>} : vector<4x2xf32>, vector<2x2xf32>, vector<4x2xf32> -> vector<4x2xf32>
    %cst_7 = arith.constant dense<0.000000e+00> : vector<4x4xf32>
    %5 = tpu.matmul %4, %1, %cst_7 {dimension_numbers = #tpu.dot_dimension_numbers<[1], [0], [0], [1], [0, 0, 1, 1], [], []>} : vector<4x2xf32>, vector<2x4xf32>, vector<4x4xf32> -> vector<4x4xf32>
    %c0_8 = arith.constant 0 : index
    %c0_9 = arith.constant 0 : index
    %c0_10 = arith.constant 0 : index
    %c0_11 = arith.constant 0 : index
    %6 = vector.load %arg5[%c0_8, %c0_9, %c0_10, %c0_11] : memref<1x16x4x4xf32, #tpu.memory_space<vmem>>, vector<1x1x4x4xf32>
    %7 = vector.shape_cast %6 : vector<1x1x4x4xf32> to vector<4x4xf32>
    %8 = vector.shape_cast %5 : vector<4x4xf32> to vector<1x1x4x4xf32>
    tpu.vector_store %arg5[%c0_8, %c0_9, %c0_10, %c0_11], %8 {strides = array<i32>} : memref<1x16x4x4xf32, #tpu.memory_space<vmem>>, vector<1x1x4x4xf32>,
    %c0_12 = arith.constant 0 : index
    %c1 = arith.constant 1 : index
    %c0_13 = arith.constant 0 : index
    %c0_14 = arith.constant 0 : index
    %9 = vector.load %arg2[%c0_12, %c1, %c0_13, %c0_14] : memref<1x16x2x2xf32, #tpu.memory_space<vmem>>, vector<1x1x2x2xf32>
    %10 = vector.shape_cast %9 : vector<1x1x2x2xf32> to vector<2x2xf32>
    %cst_15 = arith.constant dense<0.000000e+00> : vector<4x2xf32>
    %11 = tpu.matmul %0, %10, %cst_15 {dimension_numbers = #tpu.dot_dimension_numbers<[1], [0], [0], [1], [0, 0, 1, 1], [], []>} : vector<4x2xf32>, vector<2x2xf32>, vector<4x2xf32> -> vector<4x2xf32>
    %cst_16 = arith.constant dense<0.000000e+00> : vector<4x4xf32>
    %12 = tpu.matmul %11, %1, %cst_16 {dimension_numbers = #tpu.dot_dimension_numbers<[1], [0], [0], [1], [0, 0, 1, 1], [], []>} : vector<4x2xf32>, vector<2x4xf32>, vector<4x4xf32> -> vector<4x4xf32>
    %c0_17 = arith.constant 0 : index
    %c1_18 = arith.constant 1 : index
    %c0_19 = arith.constant 0 : index
    %c0_20 = arith.constant 0 : index
    %13 = vector.load %arg5[%c0_17, %c1_18, %c0_19, %c0_20] : memref<1x16x4x4xf32, #tpu.memory_space<vmem>>, vector<1x1x4x4xf32>
    %14 = vector.shape_cast %13 : vector<1x1x4x4xf32> to vector<4x4xf32>
    %15 = vector.shape_cast %12 : vector<4x4xf32> to vector<1x1x4x4xf32>
    tpu.vector_store %arg5[%c0_17, %c1_18, %c0_19, %c0_20], %15 {strides = array<i32>} : memref<1x16x4x4xf32, #tpu.memory_space<vmem>>, vector<1x1x4x4xf32>,
    %c0_21 = arith.constant 0 : index
    %c2 = arith.constant 2 : index
    %c0_22 = arith.constant 0 : index
    %c0_23 = arith.constant 0 : index
    %16 = vector.load %arg2[%c0_21, %c2, %c0_22, %c0_23] : memref<1x16x2x2xf32, #tpu.memory_space<vmem>>, vector<1x1x2x2xf32>
    %17 = vector.shape_cast %16 : vector<1x1x2x2xf32> to vector<2x2xf32>
    %cst_24 = arith.constant dense<0.000000e+00> : vector<4x2xf32>
    %18 = tpu.matmul %0, %17, %cst_24 {dimension_numbers = #tpu.dot_dimension_numbers<[1], [0], [0], [1], [0, 0, 1, 1], [], []>} : vector<4x2xf32>, vector<2x2xf32>, vector<4x2xf32> -> vector<4x2xf32>
    %cst_25 = arith.constant dense<0.000000e+00> : vector<4x4xf32>
    %19 = tpu.matmul %18, %1, %cst_25 {dimension_numbers = #tpu.dot_dimension_numbers<[1], [0], [0], [1], [0, 0, 1, 1], [], []>} : vector<4x2xf32>, vector<2x4xf32>, vector<4x4xf32> -> vector<4x4xf32>
    %c0_26 = arith.constant 0 : index
    %c2_27 = arith.constant 2 : index
    %c0_28 = arith.constant 0 : index
    %c0_29 = arith.constant 0 : index
    %20 = vector.load %arg5[%c0_26, %c2_27, %c0_28, %c0_29] : memref<1x16x4x4xf32, #tpu.memory_space<vmem>>, vector<1x1x4x4xf32>
    %21 = vector.shape_cast %20 : vector<1x1x4x4xf32> to vector<4x4xf32>
    %22 = vector.shape_cast %19 : vector<4x4xf32> to vector<1x1x4x4xf32>
    tpu.vector_store %arg5[%c0_26, %c2_27, %c0_28, %c0_29], %22 {strides = array<i32>} : memref<1x16x4x4xf32, #tpu.memory_space<vmem>>, vector<1x1x4x4xf32>,
    %c0_30 = arith.constant 0 : index
    %c3 = arith.constant 3 : index
    %c0_31 = arith.constant 0 : index
    %c0_32 = arith.constant 0 : index
    %23 = vector.load %arg2[%c0_30, %c3, %c0_31, %c0_32] : memref<1x16x2x2xf32, #tpu.memory_space<vmem>>, vector<1x1x2x2xf32>
    %24 = vector.shape_cast %23 : vector<1x1x2x2xf32> to vector<2x2xf32>
    %cst_33 = arith.constant dense<0.000000e+00> : vector<4x2xf32>
    %25 = tpu.matmul %0, %24, %cst_33 {dimension_numbers = #tpu.dot_dimension_numbers<[1], [0], [0], [1], [0, 0, 1, 1], [], []>} : vector<4x2xf32>, vector<2x2xf32>, vector<4x2xf32> -> vector<4x2xf32>
    %cst_34 = arith.constant dense<0.000000e+00> : vector<4x4xf32>
    %26 = tpu.matmul %25, %1, %cst_34 {dimension_numbers = #tpu.dot_dimension_numbers<[1], [0], [0], [1], [0, 0, 1, 1], [], []>} : vector<4x2xf32>, vector<2x4xf32>, vector<4x4xf32> -> vector<4x4xf32>
    %c0_35 = arith.constant 0 : index
    %c3_36 = arith.constant 3 : index
    %c0_37 = arith.constant 0 : index
    %c0_38 = arith.constant 0 : index
    %27 = vector.load %arg5[%c0_35, %c3_36, %c0_37, %c0_38] : memref<1x16x4x4xf32, #tpu.memory_space<vmem>>, vector<1x1x4x4xf32>
    %28 = vector.shape_cast %27 : vector<1x1x4x4xf32> to vector<4x4xf32>
    %29 = vector.shape_cast %26 : vector<4x4xf32> to vector<1x1x4x4xf32>
    tpu.vector_store %arg5[%c0_35, %c3_36, %c0_37, %c0_38], %29 {strides = array<i32>} : memref<1x16x4x4xf32, #tpu.memory_space<vmem>>, vector<1x1x4x4xf32>,
    %c0_39 = arith.constant 0 : index
    %c4 = arith.constant 4 : index
    %c0_40 = arith.constant 0 : index
    %c0_41 = arith.constant 0 : index
    %30 = vector.load %arg2[%c0_39, %c4, %c0_40, %c0_41] : memref<1x16x2x2xf32, #tpu.memory_space<vmem>>, vector<1x1x2x2xf32>
    %31 = vector.shape_cast %30 : vector<1x1x2x2xf32> to vector<2x2xf32>
    %cst_42 = arith.constant dense<0.000000e+00> : vector<4x2xf32>
    %32 = tpu.matmul %0, %31, %cst_42 {dimension_numbers = #tpu.dot_dimension_numbers<[1], [0], [0], [1], [0, 0, 1, 1], [], []>} : vector<4x2xf32>, vector<2x2xf32>, vector<4x2xf32> -> vector<4x2xf32>
    %cst_43 = arith.constant dense<0.000000e+00> : vector<4x4xf32>
    %33 = tpu.matmul %32, %1, %cst_43 {dimension_numbers = #tpu.dot_dimension_numbers<[1], [0], [0], [1], [0, 0, 1, 1], [], []>} : vector<4x2xf32>, vector<2x4xf32>, vector<4x4xf32> -> vector<4x4xf32>
    %c0_44 = arith.constant 0 : index
    %c4_45 = arith.constant 4 : index
    %c0_46 = arith.constant 0 : index
    %c0_47 = arith.constant 0 : index
    %34 = vector.load %arg5[%c0_44, %c4_45, %c0_46, %c0_47] : memref<1x16x4x4xf32, #tpu.memory_space<vmem>>, vector<1x1x4x4xf32>
    %35 = vector.shape_cast %34 : vector<1x1x4x4xf32> to vector<4x4xf32>
    %36 = vector.shape_cast %33 : vector<4x4xf32> to vector<1x1x4x4xf32>
    tpu.vector_store %arg5[%c0_44, %c4_45, %c0_46, %c0_47], %36 {strides = array<i32>} : memref<1x16x4x4xf32, #tpu.memory_space<vmem>>, vector<1x1x4x4xf32>,
    %c0_48 = arith.constant 0 : index
    %c5 = arith.constant 5 : index
    %c0_49 = arith.constant 0 : index
    %c0_50 = arith.constant 0 : index
    %37 = vector.load %arg2[%c0_48, %c5, %c0_49, %c0_50] : memref<1x16x2x2xf32, #tpu.memory_space<vmem>>, vector<1x1x2x2xf32>
    %38 = vector.shape_cast %37 : vector<1x1x2x2xf32> to vector<2x2xf32>
    %cst_51 = arith.constant dense<0.000000e+00> : vector<4x2xf32>
    %39 = tpu.matmul %0, %38, %cst_51 {dimension_numbers = #tpu.dot_dimension_numbers<[1], [0], [0], [1], [0, 0, 1, 1], [], []>} : vector<4x2xf32>, vector<2x2xf32>, vector<4x2xf32> -> vector<4x2xf32>
    %cst_52 = arith.constant dense<0.000000e+00> : vector<4x4xf32>
    %40 = tpu.matmul %39, %1, %cst_52 {dimension_numbers = #tpu.dot_dimension_numbers<[1], [0], [0], [1], [0, 0, 1, 1], [], []>} : vector<4x2xf32>, vector<2x4xf32>, vector<4x4xf32> -> vector<4x4xf32>
    %c0_53 = arith.constant 0 : index
    %c5_54 = arith.constant 5 : index
    %c0_55 = arith.constant 0 : index
    %c0_56 = arith.constant 0 : index
    %41 = vector.load %arg5[%c0_53, %c5_54, %c0_55, %c0_56] : memref<1x16x4x4xf32, #tpu.memory_space<vmem>>, vector<1x1x4x4xf32>
    %42 = vector.shape_cast %41 : vector<1x1x4x4xf32> to vector<4x4xf32>
    %43 = vector.shape_cast %40 : vector<4x4xf32> to vector<1x1x4x4xf32>
    tpu.vector_store %arg5[%c0_53, %c5_54, %c0_55, %c0_56], %43 {strides = array<i32>} : memref<1x16x4x4xf32, #tpu.memory_space<vmem>>, vector<1x1x4x4xf32>,
    %c0_57 = arith.constant 0 : index
    %c6 = arith.constant 6 : index
    %c0_58 = arith.constant 0 : index
    %c0_59 = arith.constant 0 : index
    %44 = vector.load %arg2[%c0_57, %c6, %c0_58, %c0_59] : memref<1x16x2x2xf32, #tpu.memory_space<vmem>>, vector<1x1x2x2xf32>
    %45 = vector.shape_cast %44 : vector<1x1x2x2xf32> to vector<2x2xf32>
    %cst_60 = arith.constant dense<0.000000e+00> : vector<4x2xf32>
    %46 = tpu.matmul %0, %45, %cst_60 {dimension_numbers = #tpu.dot_dimension_numbers<[1], [0], [0], [1], [0, 0, 1, 1], [], []>} : vector<4x2xf32>, vector<2x2xf32>, vector<4x2xf32> -> vector<4x2xf32>
    %cst_61 = arith.constant dense<0.000000e+00> : vector<4x4xf32>
    %47 = tpu.matmul %46, %1, %cst_61 {dimension_numbers = #tpu.dot_dimension_numbers<[1], [0], [0], [1], [0, 0, 1, 1], [], []>} : vector<4x2xf32>, vector<2x4xf32>, vector<4x4xf32> -> vector<4x4xf32>
    %c0_62 = arith.constant 0 : index
    %c6_63 = arith.constant 6 : index
    %c0_64 = arith.constant 0 : index
    %c0_65 = arith.constant 0 : index
    %48 = vector.load %arg5[%c0_62, %c6_63, %c0_64, %c0_65] : memref<1x16x4x4xf32, #tpu.memory_space<vmem>>, vector<1x1x4x4xf32>
    %49 = vector.shape_cast %48 : vector<1x1x4x4xf32> to vector<4x4xf32>
    %50 = vector.shape_cast %47 : vector<4x4xf32> to vector<1x1x4x4xf32>
    tpu.vector_store %arg5[%c0_62, %c6_63, %c0_64, %c0_65], %50 {strides = array<i32>} : memref<1x16x4x4xf32, #tpu.memory_space<vmem>>, vector<1x1x4x4xf32>,
    %c0_66 = arith.constant 0 : index
    %c7 = arith.constant 7 : index
    %c0_67 = arith.constant 0 : index
    %c0_68 = arith.constant 0 : index
    %51 = vector.load %arg2[%c0_66, %c7, %c0_67, %c0_68] : memref<1x16x2x2xf32, #tpu.memory_space<vmem>>, vector<1x1x2x2xf32>
    %52 = vector.shape_cast %51 : vector<1x1x2x2xf32> to vector<2x2xf32>
    %cst_69 = arith.constant dense<0.000000e+00> : vector<4x2xf32>
    %53 = tpu.matmul %0, %52, %cst_69 {dimension_numbers = #tpu.dot_dimension_numbers<[1], [0], [0], [1], [0, 0, 1, 1], [], []>} : vector<4x2xf32>, vector<2x2xf32>, vector<4x2xf32> -> vector<4x2xf32>
    %cst_70 = arith.constant dense<0.000000e+00> : vector<4x4xf32>
    %54 = tpu.matmul %53, %1, %cst_70 {dimension_numbers = #tpu.dot_dimension_numbers<[1], [0], [0], [1], [0, 0, 1, 1], [], []>} : vector<4x2xf32>, vector<2x4xf32>, vector<4x4xf32> -> vector<4x4xf32>
    %c0_71 = arith.constant 0 : index
    %c7_72 = arith.constant 7 : index
    %c0_73 = arith.constant 0 : index
    %c0_74 = arith.constant 0 : index
    %55 = vector.load %arg5[%c0_71, %c7_72, %c0_73, %c0_74] : memref<1x16x4x4xf32, #tpu.memory_space<vmem>>, vector<1x1x4x4xf32>
    %56 = vector.shape_cast %55 : vector<1x1x4x4xf32> to vector<4x4xf32>
    %57 = vector.shape_cast %54 : vector<4x4xf32> to vector<1x1x4x4xf32>
    tpu.vector_store %arg5[%c0_71, %c7_72, %c0_73, %c0_74], %57 {strides = array<i32>} : memref<1x16x4x4xf32, #tpu.memory_space<vmem>>, vector<1x1x4x4xf32>,
    %c0_75 = arith.constant 0 : index
    %c8 = arith.constant 8 : index
    %c0_76 = arith.constant 0 : index
    %c0_77 = arith.constant 0 : index
    %58 = vector.load %arg2[%c0_75, %c8, %c0_76, %c0_77] : memref<1x16x2x2xf32, #tpu.memory_space<vmem>>, vector<1x1x2x2xf32>
    %59 = vector.shape_cast %58 : vector<1x1x2x2xf32> to vector<2x2xf32>
    %cst_78 = arith.constant dense<0.000000e+00> : vector<4x2xf32>
    %60 = tpu.matmul %0, %59, %cst_78 {dimension_numbers = #tpu.dot_dimension_numbers<[1], [0], [0], [1], [0, 0, 1, 1], [], []>} : vector<4x2xf32>, vector<2x2xf32>, vector<4x2xf32> -> vector<4x2xf32>
    %cst_79 = arith.constant dense<0.000000e+00> : vector<4x4xf32>
    %61 = tpu.matmul %60, %1, %cst_79 {dimension_numbers = #tpu.dot_dimension_numbers<[1], [0], [0], [1], [0, 0, 1, 1], [], []>} : vector<4x2xf32>, vector<2x4xf32>, vector<4x4xf32> -> vector<4x4xf32>
    %c0_80 = arith.constant 0 : index
    %c8_81 = arith.constant 8 : index
    %c0_82 = arith.constant 0 : index
    %c0_83 = arith.constant 0 : index
    %62 = vector.load %arg5[%c0_80, %c8_81, %c0_82, %c0_83] : memref<1x16x4x4xf32, #tpu.memory_space<vmem>>, vector<1x1x4x4xf32>
    %63 = vector.shape_cast %62 : vector<1x1x4x4xf32> to vector<4x4xf32>
    %64 = vector.shape_cast %61 : vector<4x4xf32> to vector<1x1x4x4xf32>
    tpu.vector_store %arg5[%c0_80, %c8_81, %c0_82, %c0_83], %64 {strides = array<i32>} : memref<1x16x4x4xf32, #tpu.memory_space<vmem>>, vector<1x1x4x4xf32>,
    %c0_84 = arith.constant 0 : index
    %c9 = arith.constant 9 : index
    %c0_85 = arith.constant 0 : index
    %c0_86 = arith.constant 0 : index
    %65 = vector.load %arg2[%c0_84, %c9, %c0_85, %c0_86] : memref<1x16x2x2xf32, #tpu.memory_space<vmem>>, vector<1x1x2x2xf32>
    %66 = vector.shape_cast %65 : vector<1x1x2x2xf32> to vector<2x2xf32>
    %cst_87 = arith.constant dense<0.000000e+00> : vector<4x2xf32>
    %67 = tpu.matmul %0, %66, %cst_87 {dimension_numbers = #tpu.dot_dimension_numbers<[1], [0], [0], [1], [0, 0, 1, 1], [], []>} : vector<4x2xf32>, vector<2x2xf32>, vector<4x2xf32> -> vector<4x2xf32>
    %cst_88 = arith.constant dense<0.000000e+00> : vector<4x4xf32>
    %68 = tpu.matmul %67, %1, %cst_88 {dimension_numbers = #tpu.dot_dimension_numbers<[1], [0], [0], [1], [0, 0, 1, 1], [], []>} : vector<4x2xf32>, vector<2x4xf32>, vector<4x4xf32> -> vector<4x4xf32>
    %c0_89 = arith.constant 0 : index
    %c9_90 = arith.constant 9 : index
    %c0_91 = arith.constant 0 : index
    %c0_92 = arith.constant 0 : index
    %69 = vector.load %arg5[%c0_89, %c9_90, %c0_91, %c0_92] : memref<1x16x4x4xf32, #tpu.memory_space<vmem>>, vector<1x1x4x4xf32>
    %70 = vector.shape_cast %69 : vector<1x1x4x4xf32> to vector<4x4xf32>
    %71 = vector.shape_cast %68 : vector<4x4xf32> to vector<1x1x4x4xf32>
    tpu.vector_store %arg5[%c0_89, %c9_90, %c0_91, %c0_92], %71 {strides = array<i32>} : memref<1x16x4x4xf32, #tpu.memory_space<vmem>>, vector<1x1x4x4xf32>,
    %c0_93 = arith.constant 0 : index
    %c10 = arith.constant 10 : index
    %c0_94 = arith.constant 0 : index
    %c0_95 = arith.constant 0 : index
    %72 = vector.load %arg2[%c0_93, %c10, %c0_94, %c0_95] : memref<1x16x2x2xf32, #tpu.memory_space<vmem>>, vector<1x1x2x2xf32>
    %73 = vector.shape_cast %72 : vector<1x1x2x2xf32> to vector<2x2xf32>
    %cst_96 = arith.constant dense<0.000000e+00> : vector<4x2xf32>
    %74 = tpu.matmul %0, %73, %cst_96 {dimension_numbers = #tpu.dot_dimension_numbers<[1], [0], [0], [1], [0, 0, 1, 1], [], []>} : vector<4x2xf32>, vector<2x2xf32>, vector<4x2xf32> -> vector<4x2xf32>
    %cst_97 = arith.constant dense<0.000000e+00> : vector<4x4xf32>
    %75 = tpu.matmul %74, %1, %cst_97 {dimension_numbers = #tpu.dot_dimension_numbers<[1], [0], [0], [1], [0, 0, 1, 1], [], []>} : vector<4x2xf32>, vector<2x4xf32>, vector<4x4xf32> -> vector<4x4xf32>
    %c0_98 = arith.constant 0 : index
    %c10_99 = arith.constant 10 : index
    %c0_100 = arith.constant 0 : index
    %c0_101 = arith.constant 0 : index
    %76 = vector.load %arg5[%c0_98, %c10_99, %c0_100, %c0_101] : memref<1x16x4x4xf32, #tpu.memory_space<vmem>>, vector<1x1x4x4xf32>
    %77 = vector.shape_cast %76 : vector<1x1x4x4xf32> to vector<4x4xf32>
    %78 = vector.shape_cast %75 : vector<4x4xf32> to vector<1x1x4x4xf32>
    tpu.vector_store %arg5[%c0_98, %c10_99, %c0_100, %c0_101], %78 {strides = array<i32>} : memref<1x16x4x4xf32, #tpu.memory_space<vmem>>, vector<1x1x4x4xf32>,
    %c0_102 = arith.constant 0 : index
    %c11 = arith.constant 11 : index
    %c0_103 = arith.constant 0 : index
    %c0_104 = arith.constant 0 : index
    %79 = vector.load %arg2[%c0_102, %c11, %c0_103, %c0_104] : memref<1x16x2x2xf32, #tpu.memory_space<vmem>>, vector<1x1x2x2xf32>
    %80 = vector.shape_cast %79 : vector<1x1x2x2xf32> to vector<2x2xf32>
    %cst_105 = arith.constant dense<0.000000e+00> : vector<4x2xf32>
    %81 = tpu.matmul %0, %80, %cst_105 {dimension_numbers = #tpu.dot_dimension_numbers<[1], [0], [0], [1], [0, 0, 1, 1], [], []>} : vector<4x2xf32>, vector<2x2xf32>, vector<4x2xf32> -> vector<4x2xf32>
    %cst_106 = arith.constant dense<0.000000e+00> : vector<4x4xf32>
    %82 = tpu.matmul %81, %1, %cst_106 {dimension_numbers = #tpu.dot_dimension_numbers<[1], [0], [0], [1], [0, 0, 1, 1], [], []>} : vector<4x2xf32>, vector<2x4xf32>, vector<4x4xf32> -> vector<4x4xf32>
    %c0_107 = arith.constant 0 : index
    %c11_108 = arith.constant 11 : index
    %c0_109 = arith.constant 0 : index
    %c0_110 = arith.constant 0 : index
    %83 = vector.load %arg5[%c0_107, %c11_108, %c0_109, %c0_110] : memref<1x16x4x4xf32, #tpu.memory_space<vmem>>, vector<1x1x4x4xf32>
    %84 = vector.shape_cast %83 : vector<1x1x4x4xf32> to vector<4x4xf32>
    %85 = vector.shape_cast %82 : vector<4x4xf32> to vector<1x1x4x4xf32>
    tpu.vector_store %arg5[%c0_107, %c11_108, %c0_109, %c0_110], %85 {strides = array<i32>} : memref<1x16x4x4xf32, #tpu.memory_space<vmem>>, vector<1x1x4x4xf32>,
    %c0_111 = arith.constant 0 : index
    %c12 = arith.constant 12 : index
    %c0_112 = arith.constant 0 : index
    %c0_113 = arith.constant 0 : index
    %86 = vector.load %arg2[%c0_111, %c12, %c0_112, %c0_113] : memref<1x16x2x2xf32, #tpu.memory_space<vmem>>, vector<1x1x2x2xf32>
    %87 = vector.shape_cast %86 : vector<1x1x2x2xf32> to vector<2x2xf32>
    %cst_114 = arith.constant dense<0.000000e+00> : vector<4x2xf32>
    %88 = tpu.matmul %0, %87, %cst_114 {dimension_numbers = #tpu.dot_dimension_numbers<[1], [0], [0], [1], [0, 0, 1, 1], [], []>} : vector<4x2xf32>, vector<2x2xf32>, vector<4x2xf32> -> vector<4x2xf32>
    %cst_115 = arith.constant dense<0.000000e+00> : vector<4x4xf32>
    %89 = tpu.matmul %88, %1, %cst_115 {dimension_numbers = #tpu.dot_dimension_numbers<[1], [0], [0], [1], [0, 0, 1, 1], [], []>} : vector<4x2xf32>, vector<2x4xf32>, vector<4x4xf32> -> vector<4x4xf32>
    %c0_116 = arith.constant 0 : index
    %c12_117 = arith.constant 12 : index
    %c0_118 = arith.constant 0 : index
    %c0_119 = arith.constant 0 : index
    %90 = vector.load %arg5[%c0_116, %c12_117, %c0_118, %c0_119] : memref<1x16x4x4xf32, #tpu.memory_space<vmem>>, vector<1x1x4x4xf32>
    %91 = vector.shape_cast %90 : vector<1x1x4x4xf32> to vector<4x4xf32>
    %92 = vector.shape_cast %89 : vector<4x4xf32> to vector<1x1x4x4xf32>
    tpu.vector_store %arg5[%c0_116, %c12_117, %c0_118, %c0_119], %92 {strides = array<i32>} : memref<1x16x4x4xf32, #tpu.memory_space<vmem>>, vector<1x1x4x4xf32>,
    %c0_120 = arith.constant 0 : index
    %c13 = arith.constant 13 : index
    %c0_121 = arith.constant 0 : index
    %c0_122 = arith.constant 0 : index
    %93 = vector.load %arg2[%c0_120, %c13, %c0_121, %c0_122] : memref<1x16x2x2xf32, #tpu.memory_space<vmem>>, vector<1x1x2x2xf32>
    %94 = vector.shape_cast %93 : vector<1x1x2x2xf32> to vector<2x2xf32>
    %cst_123 = arith.constant dense<0.000000e+00> : vector<4x2xf32>
    %95 = tpu.matmul %0, %94, %cst_123 {dimension_numbers = #tpu.dot_dimension_numbers<[1], [0], [0], [1], [0, 0, 1, 1], [], []>} : vector<4x2xf32>, vector<2x2xf32>, vector<4x2xf32> -> vector<4x2xf32>
    %cst_124 = arith.constant dense<0.000000e+00> : vector<4x4xf32>
    %96 = tpu.matmul %95, %1, %cst_124 {dimension_numbers = #tpu.dot_dimension_numbers<[1], [0], [0], [1], [0, 0, 1, 1], [], []>} : vector<4x2xf32>, vector<2x4xf32>, vector<4x4xf32> -> vector<4x4xf32>
    %c0_125 = arith.constant 0 : index
    %c13_126 = arith.constant 13 : index
    %c0_127 = arith.constant 0 : index
    %c0_128 = arith.constant 0 : index
    %97 = vector.load %arg5[%c0_125, %c13_126, %c0_127, %c0_128] : memref<1x16x4x4xf32, #tpu.memory_space<vmem>>, vector<1x1x4x4xf32>
    %98 = vector.shape_cast %97 : vector<1x1x4x4xf32> to vector<4x4xf32>
    %99 = vector.shape_cast %96 : vector<4x4xf32> to vector<1x1x4x4xf32>
    tpu.vector_store %arg5[%c0_125, %c13_126, %c0_127, %c0_128], %99 {strides = array<i32>} : memref<1x16x4x4xf32, #tpu.memory_space<vmem>>, vector<1x1x4x4xf32>,
    %c0_129 = arith.constant 0 : index
    %c14 = arith.constant 14 : index
    %c0_130 = arith.constant 0 : index
    %c0_131 = arith.constant 0 : index
    %100 = vector.load %arg2[%c0_129, %c14, %c0_130, %c0_131] : memref<1x16x2x2xf32, #tpu.memory_space<vmem>>, vector<1x1x2x2xf32>
    %101 = vector.shape_cast %100 : vector<1x1x2x2xf32> to vector<2x2xf32>
    %cst_132 = arith.constant dense<0.000000e+00> : vector<4x2xf32>
    %102 = tpu.matmul %0, %101, %cst_132 {dimension_numbers = #tpu.dot_dimension_numbers<[1], [0], [0], [1], [0, 0, 1, 1], [], []>} : vector<4x2xf32>, vector<2x2xf32>, vector<4x2xf32> -> vector<4x2xf32>
    %cst_133 = arith.constant dense<0.000000e+00> : vector<4x4xf32>
    %103 = tpu.matmul %102, %1, %cst_133 {dimension_numbers = #tpu.dot_dimension_numbers<[1], [0], [0], [1], [0, 0, 1, 1], [], []>} : vector<4x2xf32>, vector<2x4xf32>, vector<4x4xf32> -> vector<4x4xf32>
    %c0_134 = arith.constant 0 : index
    %c14_135 = arith.constant 14 : index
    %c0_136 = arith.constant 0 : index
    %c0_137 = arith.constant 0 : index
    %104 = vector.load %arg5[%c0_134, %c14_135, %c0_136, %c0_137] : memref<1x16x4x4xf32, #tpu.memory_space<vmem>>, vector<1x1x4x4xf32>
    %105 = vector.shape_cast %104 : vector<1x1x4x4xf32> to vector<4x4xf32>
    %106 = vector.shape_cast %103 : vector<4x4xf32> to vector<1x1x4x4xf32>
    tpu.vector_store %arg5[%c0_134, %c14_135, %c0_136, %c0_137], %106 {strides = array<i32>} : memref<1x16x4x4xf32, #tpu.memory_space<vmem>>, vector<1x1x4x4xf32>,
    %c0_138 = arith.constant 0 : index
    %c15 = arith.constant 15 : index
    %c0_139 = arith.constant 0 : index
    %c0_140 = arith.constant 0 : index
    %107 = vector.load %arg2[%c0_138, %c15, %c0_139, %c0_140] : memref<1x16x2x2xf32, #tpu.memory_space<vmem>>, vector<1x1x2x2xf32>
    %108 = vector.shape_cast %107 : vector<1x1x2x2xf32> to vector<2x2xf32>
    %cst_141 = arith.constant dense<0.000000e+00> : vector<4x2xf32>
    %109 = tpu.matmul %0, %108, %cst_141 {dimension_numbers = #tpu.dot_dimension_numbers<[1], [0], [0], [1], [0, 0, 1, 1], [], []>} : vector<4x2xf32>, vector<2x2xf32>, vector<4x2xf32> -> vector<4x2xf32>
    %cst_142 = arith.constant dense<0.000000e+00> : vector<4x4xf32>
    %110 = tpu.matmul %109, %1, %cst_142 {dimension_numbers = #tpu.dot_dimension_numbers<[1], [0], [0], [1], [0, 0, 1, 1], [], []>} : vector<4x2xf32>, vector<2x4xf32>, vector<4x4xf32> -> vector<4x4xf32>
    %c0_143 = arith.constant 0 : index
    %c15_144 = arith.constant 15 : index
    %c0_145 = arith.constant 0 : index
    %c0_146 = arith.constant 0 : index
    %111 = vector.load %arg5[%c0_143, %c15_144, %c0_145, %c0_146] : memref<1x16x4x4xf32, #tpu.memory_space<vmem>>, vector<1x1x4x4xf32>
    %112 = vector.shape_cast %111 : vector<1x1x4x4xf32> to vector<4x4xf32>
    %113 = vector.shape_cast %110 : vector<4x4xf32> to vector<1x1x4x4xf32>
    tpu.vector_store %arg5[%c0_143, %c15_144, %c0_145, %c0_146], %113 {strides = array<i32>} : memref<1x16x4x4xf32, #tpu.memory_space<vmem>>, vector<1x1x4x4xf32>,
    return
  }
  func.func @transform_0(%arg0: i32, %arg1: i32) -> (i32, i32, i32, i32) {
    %c0_i32 = arith.constant 0 : i32
    %c0_i32_0 = arith.constant 0 : i32
    %c0_i32_1 = arith.constant 0 : i32
    return %arg0, %arg1, %c0_i32, %c0_i32_0 : i32, i32, i32, i32
  }
  func.func @transform_1(%arg0: i32, %arg1: i32) -> (i32, i32) {
    %c0_i32 = arith.constant 0 : i32
    %c0_i32_0 = arith.constant 0 : i32
    %c0_i32_1 = arith.constant 0 : i32
    return %c0_i32, %c0_i32_0 : i32, i32
  }
  func.func @transform_2(%arg0: i32, %arg1: i32) -> (i32, i32) {
    %c0_i32 = arith.constant 0 : i32
    %c0_i32_0 = arith.constant 0 : i32
    %c0_i32_1 = arith.constant 0 : i32
    return %c0_i32, %c0_i32_0 : i32, i32
  }
  func.func @transform_3(%arg0: i32, %arg1: i32) -> (i32, i32, i32, i32) {
    %c0_i32 = arith.constant 0 : i32
    %c0_i32_0 = arith.constant 0 : i32
    %c0_i32_1 = arith.constant 0 : i32
    return %arg0, %arg1, %c0_i32, %c0_i32_0 : i32, i32, i32, i32
  }
}

</mosaic_0001>

<bundles_post_ra>
// kernel: tpu_custom_call.1
= control target key start
LH: loop header
LB: loop body
LE: loop exit
PB: predicated region body
PF: predicated region fallthrough
CT: control target
= control target key end

     0   :  { %8 = vsyncpa [#allocation3], 0  ;;  %s3215_s12 = smov 0   ;;  %s3217_s13 = smov 0   ;;  %s3567_s0 = inlined_call_operand.vmem [shape: f32[2,512,2,2], index: 0, kind: input, shape index: {}]   ;;  %s3568_s1 = inlined_call_operand.vmem [shape: f32[4,2], index: 1, kind: input, shape index: {}]   ;;  %s3569_s2 = inlined_call_operand.hbm [shape: f32[2,4], index: 2, kind: input, shape index: {}]   ;;  %s3570_s3 = inlined_call_operand.vmem [shape: f32[2,512,4,4], index: 3, kind: output, shape index: {}]  }
   0x1   :  { %s3219_s14 = smov 0   ;;  %s3221_s15 = smov 0  }
   0x2   :  { %s3223_s16 = smov 0  }
   0x3 LB: > { %s2734_s17 = sadd.s32 4294967295, %s3190_s16   ;;  %s23_s18 = sadd.s32 1, %s3182_s14  ;;  %s3190_s16 = sphi %s3223_s16, %s14_s16   ;;  %s3186_s15 = sphi %s3221_s15, %s3582_s15   ;;  %s3182_s14 = sphi %s3219_s14, %s3581_s14   ;;  %s3178_s13 = sphi %s3217_s13, %s3580_s13   ;;  %s3174_s12 = sphi %s3215_s12, %s3579_s12  }
   0x4   : > { %p24_p0 = scmp.ge.s32.totalorder %s23_s18, 32  ;;  %s26_s19 = sadd.s32 1, %s3186_s15 }
   0x5   : > { %p2736_p1 = scmp.ge.s32.totalorder %s3190_s16, 1  ;;  %p129_p2 = scmp.lt.s32.totalorder %s3190_s16, 65 }
   0x6   : > { %s3584_s18 = smov (%p24_p0, %s23_s18), 0  ;;  %s3586_s19 = smov (!%p24_p0, %s26_s19), %s3186_s15 }
   0x7   : > { %p3248_p3 = pnand %p2736_p1, %p129_p2  ;;  %p28_p4 = scmp.ge.s32.totalorder %s3586_s19, 2 }
   0x8   : > { %p3252_p5 = scmp.eq.s32.totalorder %s2734_s17, 0  ;;  %s3192_s22 = smov [#allocation2]  }
   0x9   : > { %s3574_s20 = scalar_select %p3248_p3, 1, 0 }
   0xa   : > { %s3575_s21 = scalar_select %p3252_p5, 1, 0 }
   0xb   : > { %p3071_p6 = pneg %p3248_p3  ;;  %s3588_s19 = smov (%p28_p4, %s3586_s19), 0 }
   0xc   : > { %s145_s23 = sshll.u32 %s3192_s22, 4  ;;  %s3120_s27 = scalar_lea.hbm %s3569_s2, 32  ;;  %s146_s23 = int_to_ptr.vmem [resolvable:$true] %s145_s23 }
   0xd   : > { %p3262_p7 = pnand %p3252_p5, %p3071_p6  ;;  %p3121_p8 = scmp.ne.s32.totalorder %s3569_s2, %s3120_s27 }
   0xe   : > { %p3127_p12 = scmp.lt.u32.totalorder %s3120_s27, %s3569_s2 }
   0xf   : > { %p3122_p9 = pneg %p3262_p7 }
  0x11   : > { %p3123_p10 = pnand %p3122_p9, %p3121_p8 }
  0x13   : > { %p3124_p11 = pneg %p3123_p10 }
  0x15   : > { %p3129_p13 = pnand %p3127_p12, %p3124_p11 }
  0x17   : > { %3132 = shalt.err (!%p3129_p13)
}
  0x18   : > { %s3133_s5 = scalar_lea.vmem %s146_s23, 32  ;;  %p3141_p4 = scmp.lt.s32.totalorder %s146_s23, %s146_s23 }
  0x19   : > { %p3134_p0 = scmp.ne.s32.totalorder %s146_s23, %s3133_s5  ;;  %p3142_p6 = scmp.lt.s32.totalorder %s3133_s5, %s3133_s5 }
  0x1b   : > { %p3136_p1 = pnand %p3134_p0, %p3122_p9  ;;  %p3143_p5 = por %p3142_p6, %p3141_p4 }
  0x1d   : > { %p3137_p2 = pneg %p3136_p1 }
  0x1f   : > { %p3144_p3 = pnand %p3143_p5, %p3137_p2 }
  0x21   : > { %3147 = shalt.err (!%p3144_p3)
}
  0x22   : > { %3074 = dma.hbm_to_vmem [thread:$0]  (!%p3262_p7), %s3569_s2, 32, %s146_s23, [#allocation3]  }
  0x23   : > { %p3577_p8 = scmp.ne.s32.totalorder %s3574_s20, 0 }
  0x24   : > { %p3578_p10 = scmp.ne.s32.totalorder (!%p3577_p8), %s3575_s21, 0 }
  0x25   : > { %171 = sbr.rel (%p3577_p8) target bundleno = 539 (0x21b), region = 32 }
  0x2c   : > { %3169 = dma.done.wait (%p3578_p10), [#allocation3], 32  }
  0x2d   : > { %3171 = vsyncadd (%p3578_p10), [#allocation3], 4294967264  ;;  %s2741_s8 = sshll.u32 %s3174_s12, 4  ;;  %p204_p3 = scmp.lt.s32.totalorder %s3178_s13, 1  ;;  %v3193_v0 = vmov 0.0   ;;  %vm3194_vm0 = vmmov 0  }
  0x2e   : > { %2907 = vmatprep.subr.mxu0 %v3193_v0  ;;  %p206_p5 = scmp.lt.s32.totalorder %s2741_s8, 511  ;;  %2912 = vmatprep.subr.mxu1 %v3193_v0  ;;  %vm230_vm1 = vcmask 1041408   ;;  %v3308_v1 = vld [vmem:[%s3568_s1] sm:$0xf]  ;;  %vm226_vm2 = vcmask 15360   ;;  %vm380_vm3 = vcmask 27648  }
  0x2f   : > { %s3590_s13 = smov (!%p204_p3, %s3178_s13), 1  ;;  %2909 = vmatprep.mubr.msk.f32.mxu0 %vm3194_vm0, %v3193_v0  ;;  %2914 = vmatprep.mubr.msk.f32.mxu1 %vm3194_vm0, %v3193_v0  ;;  %v3419_v18 = vld [vmem:[#allocation2] sm:$0x3] }
  0x30   : > { %s3592_s8 = smov (!%p206_p5, %s2741_s8), 511  ;;  %s2742_s9 = sshll.u32 %s3590_s13, 9  ;;  %2913 = vmatpush3.msk.msra.mxu1 %vm230_vm1, %v3419_v18 }
  0x31   : > { %s3297_s10 = sadd.s32 %s2742_s9, %s3592_s8  ;;  %2922 = vmatprep.subr.mxu1 %v3193_v0 }
  0x32   : > { %s2743_s11 = sshll.u32 %s3297_s10, 1  ;;  %s2746_s13 = sshll.u32 %s3297_s10, 2 }
  0x33   : > { %s3303_s20 = scalar_lea.vmem %s3567_s0, %s2743_s11  ;;  %s3518_s25 = scalar_lea.vmem %s3570_s3, %s2746_s13 }
  0x34   : > { %v225_v2 = vld [vmem:[%s3303_s20] sm:$0x3]  ;;  %v2751_v3 = vld [vmem:[%s3303_s20 + $0x2] sm:$0x3]  ;;  %v2757_v4 = vld [vmem:[%s3303_s20 + $0x4] sm:$0x3] }
  0x35   : > { %2908 = vmatpush3.msk.msra.mxu0 %vm230_vm1, %v225_v2  ;;  %v2763_v5 = vld [vmem:[%s3303_s20 + $0x6] sm:$0x3]  ;;  %v2769_v6 = vld [vmem:[%s3303_s20 + $0x8] sm:$0x3]  ;;  %v2775_v7 = vld [vmem:[%s3303_s20 + $0xa] sm:$0x3] }
  0x36   : > { %2910 = vmatmul.mubr.msk.f32.vlgmr.msra.gmra.mrb[0].mxu0 %vm226_vm2, %v3308_v1  ;;  %2917 = vmatprep.subr.mxu0 %v3193_v0  ;;  %v2781_v8 = vld [vmem:[%s3303_s20 + $0xc] sm:$0x3]  ;;  %v2787_v9 = vld [vmem:[%s3303_s20 + $0xe] sm:$0x3]  ;;  %v2793_v10 = vld [vmem:[%s3303_s20 + $0x10] sm:$0x3] }
  0x37   : > { %2918 = vmatpush3.msk.msra.mxu0 %vm230_vm1, %v2751_v3  ;;  %2919 = vmatprep.mubr.msk.f32.mxu0 %vm3194_vm0, %v3193_v0  ;;  %v2799_v11 = vld [vmem:[%s3303_s20 + $0x12] sm:$0x3]  ;;  %v2805_v12 = vld [vmem:[%s3303_s20 + $0x14] sm:$0x3]  ;;  %v2811_v13 = vld [vmem:[%s3303_s20 + $0x16] sm:$0x3] }
  0x38   : > { %2927 = vmatprep.subr.mxu0 %v3193_v0  ;;  %v2817_v14 = vld [vmem:[%s3303_s20 + $0x18] sm:$0x3]  ;;  %v2823_v15 = vld [vmem:[%s3303_s20 + $0x1a] sm:$0x3]  ;;  %v2829_v16 = vld [vmem:[%s3303_s20 + $0x1c] sm:$0x3] }
  0x39   : > { %v2835_v17 = vld [vmem:[%s3303_s20 + $0x1e] sm:$0x3] }
  0x3a   : > { %2920 = vmatmul.mubr.msk.f32.vlgmr.msra.gmra.mrb[2].mxu0 %vm226_vm2, %v3308_v1 }
  0x3b   : > { %2928 = vmatpush3.msk.msra.mxu0 %vm230_vm1, %v2757_v4  ;;  %2929 = vmatprep.mubr.msk.f32.mxu0 %vm3194_vm0, %v3193_v0 }
  0x3c   : > { %2937 = vmatprep.subr.mxu0 %v3193_v0 }
  0x3e   : > { %2930 = vmatmul.mubr.msk.f32.vlgmr.msra.gmra.mrb[4].mxu0 %vm226_vm2, %v3308_v1 }
  0x3f   : > { %2938 = vmatpush3.msk.msra.mxu0 %vm230_vm1, %v2763_v5  ;;  %2939 = vmatprep.mubr.msk.f32.mxu0 %vm3194_vm0, %v3193_v0 }
  0x40   : > { %2947 = vmatprep.subr.mxu0 %v3193_v0 }
  0x42   : > { %2940 = vmatmul.mubr.msk.f32.vlgmr.msra.gmra.mrb[6].mxu0 %vm226_vm2, %v3308_v1 }
  0x43   : > { %2948 = vmatpush3.msk.msra.mxu0 %vm230_vm1, %v2769_v6  ;;  %2949 = vmatprep.mubr.msk.f32.mxu0 %vm3194_vm0, %v3193_v0 }
  0x44   : > { %2957 = vmatprep.subr.mxu0 %v3193_v0 }
  0x46   : > { %2950 = vmatmul.mubr.msk.f32.vlgmr.msra.gmra.mrb[8].mxu0 %vm226_vm2, %v3308_v1 }
  0x47   : > { %2958 = vmatpush3.msk.msra.mxu0 %vm230_vm1, %v2775_v7  ;;  %2959 = vmatprep.mubr.msk.f32.mxu0 %vm3194_vm0, %v3193_v0 }
  0x48   : > { %2967 = vmatprep.subr.mxu0 %v3193_v0 }
  0x4a   : > { %2960 = vmatmul.mubr.msk.f32.vlgmr.msra.gmra.mrb[10].mxu0 %vm226_vm2, %v3308_v1 }
  0x4b   : > { %2968 = vmatpush3.msk.msra.mxu0 %vm230_vm1, %v2781_v8  ;;  %2969 = vmatprep.mubr.msk.f32.mxu0 %vm3194_vm0, %v3193_v0 }
  0x4c   : > { %2977 = vmatprep.subr.mxu0 %v3193_v0 }
  0x4e   : > { %2970 = vmatmul.mubr.msk.f32.vlgmr.msra.gmra.mrb[12].mxu0 %vm226_vm2, %v3308_v1 }
  0x4f   : > { %2978 = vmatpush3.msk.msra.mxu0 %vm230_vm1, %v2787_v9  ;;  %2979 = vmatprep.mubr.msk.f32.mxu0 %vm3194_vm0, %v3193_v0 }
  0x50   : > { %2987 = vmatprep.subr.mxu0 %v3193_v0 }
  0x52   : > { %2980 = vmatmul.mubr.msk.f32.vlgmr.msra.gmra.mrb[14].mxu0 %vm226_vm2, %v3308_v1 }
  0x53   : > { %2988 = vmatpush3.msk.msra.mxu0 %vm230_vm1, %v2793_v10  ;;  %2989 = vmatprep.mubr.msk.f32.mxu0 %vm3194_vm0, %v3193_v0 }
  0x54   : > { %2997 = vmatprep.subr.mxu0 %v3193_v0 }
  0x56   : > { %2990 = vmatmul.mubr.msk.f32.vlgmr.msra.gmra.mrb[16].mxu0 %vm226_vm2, %v3308_v1 }
  0x57   : > { %2998 = vmatpush3.msk.msra.mxu0 %vm230_vm1, %v2799_v11  ;;  %2999 = vmatprep.mubr.msk.f32.mxu0 %vm3194_vm0, %v3193_v0 }
  0x58   : > { %3007 = vmatprep.subr.mxu0 %v3193_v0 }
  0x5a   : > { %3000 = vmatmul.mubr.msk.f32.vlgmr.msra.gmra.mrb[18].mxu0 %vm226_vm2, %v3308_v1 }
  0x5b   : > { %3008 = vmatpush3.msk.msra.mxu0 %vm230_vm1, %v2805_v12  ;;  %3009 = vmatprep.mubr.msk.f32.mxu0 %vm3194_vm0, %v3193_v0 }
  0x5c   : > { %3017 = vmatprep.subr.mxu0 %v3193_v0 }
  0x5e   : > { %3010 = vmatmul.mubr.msk.f32.vlgmr.msra.gmra.mrb[20].mxu0 %vm226_vm2, %v3308_v1 }
  0x5f   : > { %3018 = vmatpush3.msk.msra.mxu0 %vm230_vm1, %v2811_v13  ;;  %3019 = vmatprep.mubr.msk.f32.mxu0 %vm3194_vm0, %v3193_v0 }
  0x60   : > { %3027 = vmatprep.subr.mxu0 %v3193_v0 }
  0x62   : > { %3020 = vmatmul.mubr.msk.f32.vlgmr.msra.gmra.mrb[22].mxu0 %vm226_vm2, %v3308_v1 }
  0x63   : > { %3028 = vmatpush3.msk.msra.mxu0 %vm230_vm1, %v2817_v14  ;;  %3029 = vmatprep.mubr.msk.f32.mxu0 %vm3194_vm0, %v3193_v0 }
  0x64   : > { %3037 = vmatprep.subr.mxu0 %v3193_v0 }
  0x66   : > { %3030 = vmatmul.mubr.msk.f32.vlgmr.msra.gmra.mrb[24].mxu0 %vm226_vm2, %v3308_v1 }
  0x67   : > { %3038 = vmatpush3.msk.msra.mxu0 %vm230_vm1, %v2823_v15  ;;  %3039 = vmatprep.mubr.msk.f32.mxu0 %vm3194_vm0, %v3193_v0 }
  0x68   : > { %3047 = vmatprep.subr.mxu0 %v3193_v0 }
  0x6a   : > { %3040 = vmatmul.mubr.msk.f32.vlgmr.msra.gmra.mrb[26].mxu0 %vm226_vm2, %v3308_v1 }
  0x6b   : > { %3048 = vmatpush3.msk.msra.mxu0 %vm230_vm1, %v2829_v16  ;;  %3049 = vmatprep.mubr.msk.f32.mxu0 %vm3194_vm0, %v3193_v0 }
  0x6c   : > { %3057 = vmatprep.subr.mxu0 %v3193_v0 }
  0x6e   : > { %3050 = vmatmul.mubr.msk.f32.vlgmr.msra.gmra.mrb[28].mxu0 %vm226_vm2, %v3308_v1 }
  0x6f   : > { %3058 = vmatpush3.msk.msra.mxu0 %vm230_vm1, %v2835_v17  ;;  %3059 = vmatprep.mubr.msk.f32.mxu0 %vm3194_vm0, %v3193_v0 }
  0x72   : > { %3060 = vmatmul.mubr.msk.f32.vlgmr.msra.gmra.mrb[30].mxu0 %vm226_vm2, %v3308_v1 }
 0x109   : > { %v300_v19 = vpop.f32.mrb[0].mxu0 }
 0x10a   : > { %v2911_v20 = vpop.f32.mrb[1].mxu0  ;;  %2915 = vmatmul.mubr.msk.f32.vlgmr.msra.gmra.mrb[0].mxu1 %vm226_vm2, %v300_v19 }
 0x10b   : > { %2923 = vmatpush3.msk.msra.mxu1 %vm230_vm1, %v3419_v18  ;;  %2924 = vmatprep.mubr.msk.f32.mxu1 %vm3194_vm0, %v3193_v0 }
 0x10c   : > { %2932 = vmatprep.subr.mxu1 %v3193_v0 }
 0x10d   : > { %v453_v21 = vpop.f32.mrb[2].mxu0 }
 0x10e   : > { %v2921_v22 = vpop.f32.mrb[3].mxu0  ;;  %2925 = vmatmul.mubr.msk.f32.vlgmr.msra.gmra.mrb[2].mxu1 %vm226_vm2, %v453_v21 }
 0x10f   : > { %2933 = vmatpush3.msk.msra.mxu1 %vm230_vm1, %v3419_v18  ;;  %2934 = vmatprep.mubr.msk.f32.mxu1 %vm3194_vm0, %v3193_v0 }
 0x110   : > { %2942 = vmatprep.subr.mxu1 %v3193_v0 }
 0x111   : > { %v603_v23 = vpop.f32.mrb[4].mxu0 }
 0x112   : > { %v2931_v24 = vpop.f32.mrb[5].mxu0  ;;  %2935 = vmatmul.mubr.msk.f32.vlgmr.msra.gmra.mrb[4].mxu1 %vm226_vm2, %v603_v23 }
 0x113   : > { %2943 = vmatpush3.msk.msra.mxu1 %vm230_vm1, %v3419_v18  ;;  %2944 = vmatprep.mubr.msk.f32.mxu1 %vm3194_vm0, %v3193_v0 }
 0x114   : > { %2952 = vmatprep.subr.mxu1 %v3193_v0 }
 0x115   : > { %v753_v25 = vpop.f32.mrb[6].mxu0 }
 0x116   : > { %v2941_v26 = vpop.f32.mrb[7].mxu0  ;;  %2945 = vmatmul.mubr.msk.f32.vlgmr.msra.gmra.mrb[6].mxu1 %vm226_vm2, %v753_v25 }
 0x117   : > { %2953 = vmatpush3.msk.msra.mxu1 %vm230_vm1, %v3419_v18  ;;  %2954 = vmatprep.mubr.msk.f32.mxu1 %vm3194_vm0, %v3193_v0 }
 0x118   : > { %2962 = vmatprep.subr.mxu1 %v3193_v0 }
 0x119   : > { %v903_v27 = vpop.f32.mrb[8].mxu0 }
 0x11a   : > { %v2951_v28 = vpop.f32.mrb[9].mxu0  ;;  %2955 = vmatmul.mubr.msk.f32.vlgmr.msra.gmra.mrb[8].mxu1 %vm226_vm2, %v903_v27 }
 0x11b   : > { %2963 = vmatpush3.msk.msra.mxu1 %vm230_vm1, %v3419_v18  ;;  %2964 = vmatprep.mubr.msk.f32.mxu1 %vm3194_vm0, %v3193_v0 }
 0x11c   : > { %2972 = vmatprep.subr.mxu1 %v3193_v0 }
 0x11d   : > { %v1053_v29 = vpop.f32.mrb[10].mxu0 }
 0x11e   : > { %v2961_v30 = vpop.f32.mrb[11].mxu0  ;;  %2965 = vmatmul.mubr.msk.f32.vlgmr.msra.gmra.mrb[10].mxu1 %vm226_vm2, %v1053_v29 }
 0x11f   : > { %2973 = vmatpush3.msk.msra.mxu1 %vm230_vm1, %v3419_v18  ;;  %2974 = vmatprep.mubr.msk.f32.mxu1 %vm3194_vm0, %v3193_v0 }
 0x120   : > { %2982 = vmatprep.subr.mxu1 %v3193_v0 }
 0x121   : > { %v1203_v31 = vpop.f32.mrb[12].mxu0 }
 0x122   : > { %v2971_v32 = vpop.f32.mrb[13].mxu0  ;;  %2975 = vmatmul.mubr.msk.f32.vlgmr.msra.gmra.mrb[12].mxu1 %vm226_vm2, %v1203_v31 }
 0x123   : > { %2983 = vmatpush3.msk.msra.mxu1 %vm230_vm1, %v3419_v18  ;;  %2984 = vmatprep.mubr.msk.f32.mxu1 %vm3194_vm0, %v3193_v0 }
 0x124   : > { %2992 = vmatprep.subr.mxu1 %v3193_v0 }
 0x125   : > { %v1353_v33 = vpop.f32.mrb[14].mxu0 }
 0x126   : > { %v2981_v34 = vpop.f32.mrb[15].mxu0  ;;  %2985 = vmatmul.mubr.msk.f32.vlgmr.msra.gmra.mrb[14].mxu1 %vm226_vm2, %v1353_v33 }
 0x127   : > { %2993 = vmatpush3.msk.msra.mxu1 %vm230_vm1, %v3419_v18  ;;  %2994 = vmatprep.mubr.msk.f32.mxu1 %vm3194_vm0, %v3193_v0 }
 0x128   : > { %3002 = vmatprep.subr.mxu1 %v3193_v0 }
 0x129   : > { %v1503_v35 = vpop.f32.mrb[16].mxu0 }
 0x12a   : > { %v2991_v36 = vpop.f32.mrb[17].mxu0  ;;  %2995 = vmatmul.mubr.msk.f32.vlgmr.msra.gmra.mrb[16].mxu1 %vm226_vm2, %v1503_v35 }
 0x12b   : > { %3003 = vmatpush3.msk.msra.mxu1 %vm230_vm1, %v3419_v18  ;;  %3004 = vmatprep.mubr.msk.f32.mxu1 %vm3194_vm0, %v3193_v0 }
 0x12c   : > { %3012 = vmatprep.subr.mxu1 %v3193_v0 }
 0x12d   : > { %v1653_v37 = vpop.f32.mrb[18].mxu0 }
 0x12e   : > { %v3001_v38 = vpop.f32.mrb[19].mxu0  ;;  %3005 = vmatmul.mubr.msk.f32.vlgmr.msra.gmra.mrb[18].mxu1 %vm226_vm2, %v1653_v37 }
 0x12f   : > { %3013 = vmatpush3.msk.msra.mxu1 %vm230_vm1, %v3419_v18  ;;  %3014 = vmatprep.mubr.msk.f32.mxu1 %vm3194_vm0, %v3193_v0 }
 0x130   : > { %3022 = vmatprep.subr.mxu1 %v3193_v0 }
 0x131   : > { %v1803_v39 = vpop.f32.mrb[20].mxu0 }
 0x132   : > { %v3011_v40 = vpop.f32.mrb[21].mxu0  ;;  %3015 = vmatmul.mubr.msk.f32.vlgmr.msra.gmra.mrb[20].mxu1 %vm226_vm2, %v1803_v39 }
 0x133   : > { %3023 = vmatpush3.msk.msra.mxu1 %vm230_vm1, %v3419_v18  ;;  %3024 = vmatprep.mubr.msk.f32.mxu1 %vm3194_vm0, %v3193_v0 }
 0x134   : > { %3032 = vmatprep.subr.mxu1 %v3193_v0 }
 0x135   : > { %v1953_v41 = vpop.f32.mrb[22].mxu0 }
 0x136   : > { %v3021_v42 = vpop.f32.mrb[23].mxu0  ;;  %3025 = vmatmul.mubr.msk.f32.vlgmr.msra.gmra.mrb[22].mxu1 %vm226_vm2, %v1953_v41 }
 0x137   : > { %3033 = vmatpush3.msk.msra.mxu1 %vm230_vm1, %v3419_v18  ;;  %3034 = vmatprep.mubr.msk.f32.mxu1 %vm3194_vm0, %v3193_v0 }
 0x138   : > { %3042 = vmatprep.subr.mxu1 %v3193_v0 }
 0x139   : > { %v2103_v43 = vpop.f32.mrb[24].mxu0 }
 0x13a   : > { %v3031_v44 = vpop.f32.mrb[25].mxu0  ;;  %3035 = vmatmul.mubr.msk.f32.vlgmr.msra.gmra.mrb[24].mxu1 %vm226_vm2, %v2103_v43 }
 0x13b   : > { %3043 = vmatpush3.msk.msra.mxu1 %vm230_vm1, %v3419_v18  ;;  %3044 = vmatprep.mubr.msk.f32.mxu1 %vm3194_vm0, %v3193_v0 }
 0x13c   : > { %3052 = vmatprep.subr.mxu1 %v3193_v0 }
 0x13d   : > { %v2253_v45 = vpop.f32.mrb[26].mxu0 }
 0x13e   : > { %v3041_v46 = vpop.f32.mrb[27].mxu0  ;;  %3045 = vmatmul.mubr.msk.f32.vlgmr.msra.gmra.mrb[26].mxu1 %vm226_vm2, %v2253_v45 }
 0x13f   : > { %3053 = vmatpush3.msk.msra.mxu1 %vm230_vm1, %v3419_v18  ;;  %3054 = vmatprep.mubr.msk.f32.mxu1 %vm3194_vm0, %v3193_v0 }
 0x140   : > { %3062 = vmatprep.subr.mxu1 %v3193_v0 }
 0x141   : > { %v2403_v47 = vpop.f32.mrb[28].mxu0 }
 0x142   : > { %v3051_v48 = vpop.f32.mrb[29].mxu0  ;;  %3055 = vmatmul.mubr.msk.f32.vlgmr.msra.gmra.mrb[28].mxu1 %vm226_vm2, %v2403_v47 }
 0x143   : > { %3063 = vmatpush3.msk.msra.mxu1 %vm230_vm1, %v3419_v18  ;;  %3064 = vmatprep.mubr.msk.f32.mxu1 %vm3194_vm0, %v3193_v0 }
 0x145   : > { %v2553_v49 = vpop.f32.mrb[30].mxu0 }
 0x146   : > { %v3061_v50 = vpop.f32.mrb[31].mxu0  ;;  %3065 = vmatmul.mubr.msk.f32.vlgmr.msra.gmra.mrb[30].mxu1 %vm226_vm2, %v2553_v49 }
 0x1dd   : > { %v376_v51 = vpop.f32.mrb[0].mxu1 }
 0x1de   : > { %381 = vst.msk [vmem:[%s3518_s25] sm:$0xf] %vm380_vm3, %v376_v51  ;;  %v2916_v52 = vpop.f32.mrb[1].mxu1 }
 0x1e1   : > { %v526_v53 = vpop.f32.mrb[2].mxu1 }
 0x1e2   : > { %2756 = vst.msk [vmem:[%s3518_s25 + $0x4] sm:$0xf] %vm380_vm3, %v526_v53  ;;  %v2926_v54 = vpop.f32.mrb[3].mxu1 }
 0x1e5   : > { %v676_v55 = vpop.f32.mrb[4].mxu1 }
 0x1e6   : > { %2762 = vst.msk [vmem:[%s3518_s25 + $0x8] sm:$0xf] %vm380_vm3, %v676_v55  ;;  %v2936_v56 = vpop.f32.mrb[5].mxu1 }
 0x1e9   : > { %v826_v57 = vpop.f32.mrb[6].mxu1 }
 0x1ea   : > { %2768 = vst.msk [vmem:[%s3518_s25 + $0xc] sm:$0xf] %vm380_vm3, %v826_v57  ;;  %v2946_v58 = vpop.f32.mrb[7].mxu1 }
 0x1ed   : > { %v976_v59 = vpop.f32.mrb[8].mxu1 }
 0x1ee   : > { %2774 = vst.msk [vmem:[%s3518_s25 + $0x10] sm:$0xf] %vm380_vm3, %v976_v59  ;;  %v2956_v60 = vpop.f32.mrb[9].mxu1 }
 0x1f1   : > { %v1126_v61 = vpop.f32.mrb[10].mxu1 }
 0x1f2   : > { %2780 = vst.msk [vmem:[%s3518_s25 + $0x14] sm:$0xf] %vm380_vm3, %v1126_v61  ;;  %v2966_v62 = vpop.f32.mrb[11].mxu1 }
 0x1f5   : > { %v1276_v63 = vpop.f32.mrb[12].mxu1 }
 0x1f6   : > { %2786 = vst.msk [vmem:[%s3518_s25 + $0x18] sm:$0xf] %vm380_vm3, %v1276_v63  ;;  %v2976_v0 = vpop.f32.mrb[13].mxu1 }
 0x1f9   : > { %v1426_v1 = vpop.f32.mrb[14].mxu1 }
 0x1fa   : > { %2792 = vst.msk [vmem:[%s3518_s25 + $0x1c] sm:$0xf] %vm380_vm3, %v1426_v1  ;;  %v2986_v2 = vpop.f32.mrb[15].mxu1 }
 0x1fd   : > { %v1576_v3 = vpop.f32.mrb[16].mxu1 }
 0x1fe   : > { %2798 = vst.msk [vmem:[%s3518_s25 + $0x20] sm:$0xf] %vm380_vm3, %v1576_v3  ;;  %v2996_v4 = vpop.f32.mrb[17].mxu1 }
 0x201   : > { %v1726_v5 = vpop.f32.mrb[18].mxu1 }
 0x202   : > { %2804 = vst.msk [vmem:[%s3518_s25 + $0x24] sm:$0xf] %vm380_vm3, %v1726_v5  ;;  %v3006_v6 = vpop.f32.mrb[19].mxu1 }
 0x205   : > { %v1876_v7 = vpop.f32.mrb[20].mxu1 }
 0x206   : > { %2810 = vst.msk [vmem:[%s3518_s25 + $0x28] sm:$0xf] %vm380_vm3, %v1876_v7  ;;  %v3016_v8 = vpop.f32.mrb[21].mxu1 }
 0x209   : > { %v2026_v9 = vpop.f32.mrb[22].mxu1 }
 0x20a   : > { %2816 = vst.msk [vmem:[%s3518_s25 + $0x2c] sm:$0xf] %vm380_vm3, %v2026_v9  ;;  %v3026_v10 = vpop.f32.mrb[23].mxu1 }
 0x20d   : > { %v2176_v11 = vpop.f32.mrb[24].mxu1 }
 0x20e   : > { %2822 = vst.msk [vmem:[%s3518_s25 + $0x30] sm:$0xf] %vm380_vm3, %v2176_v11  ;;  %v3036_v12 = vpop.f32.mrb[25].mxu1 }
 0x211   : > { %v2326_v13 = vpop.f32.mrb[26].mxu1 }
 0x212   : > { %2828 = vst.msk [vmem:[%s3518_s25 + $0x34] sm:$0xf] %vm380_vm3, %v2326_v13  ;;  %v3046_v14 = vpop.f32.mrb[27].mxu1 }
 0x215   : > { %v2476_v15 = vpop.f32.mrb[28].mxu1 }
 0x216   : > { %2834 = vst.msk [vmem:[%s3518_s25 + $0x38] sm:$0xf] %vm380_vm3, %v2476_v15  ;;  %v3056_v16 = vpop.f32.mrb[29].mxu1 }
 0x219   : > { %v2626_v17 = vpop.f32.mrb[30].mxu1 }
 0x21a   : > { %2840 = vst.msk [vmem:[%s3518_s25 + $0x3c] sm:$0xf] %vm380_vm3, %v2626_v17  ;;  %v3066_v18 = vpop.f32.mrb[31].mxu1 }
 0x21b PF: > { %s14_s16 = sadd.s32 1, %s3190_s16   ;;  %s3579_s12 = smov %s3182_s14 }
 0x21c   : > { %p11_p7 = scmp.ge.s32.totalorder %s14_s16, 66   ;;  %s3580_s13 = smov %s3186_s15 }
 0x21d   : > { %s3581_s14 = smov %s3584_s18  ;;  %s3582_s15 = smov %s3588_s19 }
 0x21e   :  { %13 = sbr.rel (!%p11_p7) target bundleno = 3 (0x3), region = 97 }
 0x225   :  { %2662 = vsyncpa [#allocation3], 1 }
 0x226   :  { %2664 = vsyncpa [#allocation3 + $0x1], 1 }

</bundles_post_ra>
